<compile_context>
chip_gen: v7x
topology: tpu7x:2x2x1
jax: 0.10.0
libtpu: 0.0.40
codegen_flags: <defaults>
</compile_context>

<pallas_src>
import functools

import jax
import jax.numpy as jnp
from jax.experimental import pallas as pl
from jax.experimental.pallas import tpu as pltpu


def _scaled_sigmoid_kernel(x_ref, o_ref, *, lower, scale):
    # Upcast for the transcendental; output is cast back to the I/O dtype.
    xf = x_ref[...].astype(jnp.float32)
    sig = pl.reciprocal(1.0 + jnp.exp(-xf), approx=False)  # exp + rcp -> EUP
    o_ref[...] = (lower + scale * sig).astype(o_ref.dtype)


@functools.partial(jax.jit, static_argnames=("lower", "upper"))
def scaled_sigmoid(x, *, lower=0.0, upper=10.0):
    """Elementwise lower + (upper - lower) * sigmoid(x). Any shape/dtype."""
    orig_shape = x.shape
    orig_dtype = x.dtype
    n = x.size
    itemsize = jnp.dtype(orig_dtype).itemsize

    # --- choose a lane-dense 2D layout without copying when possible --------
    lane = None
    for cand in (1024, 512, 256, 128):
        if n % cand == 0:
            lane = cand
            break

    if lane is not None:
        rows = n // lane
        x2d = jnp.reshape(x, (rows, lane))          # contiguous -> free reshape
        padded = False
    else:
        # Ragged fallback (n not a multiple of 128): minimal pad, sliced off
        # at the end.  Rare path.
        lane = 128
        rows = pl.cdiv(n, lane)
        total = rows * lane
        x2d = jnp.pad(jnp.ravel(x), (0, total - n)).reshape(rows, lane)
        padded = True

    # --- block sizing: ~4 MiB per block, (8,128)-legal -----------------------
    target_block_bytes = 4 * 1024 * 1024
    block_rows = max(1, target_block_bytes // (lane * itemsize))
    if block_rows >= rows:
        block_rows = rows                           # full extent -> always legal
    else:
        block_rows = max(8, (block_rows // 8) * 8)  # sublane-aligned

    grid = (pl.cdiv(rows, block_rows),)             # ragged tail masked by Pallas

    kernel = functools.partial(
        _scaled_sigmoid_kernel,
        lower=float(lower),
        scale=float(upper) - float(lower),
    )

    cost = pl.CostEstimate(
        flops=3 * n,
        transcendentals=n,
        bytes_accessed=2 * n * itemsize,
    )

    out2d = pl.pallas_call(
        kernel,
        out_shape=jax.ShapeDtypeStruct((rows, lane), orig_dtype),
        grid_spec=pltpu.PrefetchScalarGridSpec(
            num_scalar_prefetch=0,
            grid=grid,
            in_specs=[pl.BlockSpec((block_rows, lane), lambda i: (i, 0))],
            out_specs=pl.BlockSpec((block_rows, lane), lambda i: (i, 0)),
        ),
        compiler_params=pltpu.CompilerParams(
            dimension_semantics=("parallel",),
            vmem_limit_bytes=32 * 1024 * 1024,
        ),
        cost_estimate=cost,
    )(x2d)

    if padded:
        return out2d.reshape(-1)[:n].reshape(orig_shape)
    return out2d.reshape(orig_shape)


if __name__ == "__main__":
    key = jax.random.PRNGKey(0)
    # NCHW, small shapes: batch=2, channels=4, spatial=16x16
    x = jax.random.normal(key, (2, 4, 16, 16), dtype=jnp.float32)

    y = scaled_sigmoid(x)           # defaults: lower=0, upper=10
    y = jax.block_until_ready(y)

    # Reference check in plain JAX
    y_ref = 10.0 * jax.nn.sigmoid(x)
    assert y.shape == x.shape and y.dtype == x.dtype
    assert jnp.max(jnp.abs(y - y_ref)) < 1e-5

    print("KERNEL_OK")
</pallas_src>

<mosaic_0001>
module attributes {stable_mosaic.version = 11 : i64} {
  func.func @_scaled_sigmoid_kernel(%arg0: i32, %arg1: memref<2x1024xf32, #tpu.memory_space<vmem>>, %arg2: memref<2x1024xf32, #tpu.memory_space<vmem>>) attributes {dimension_semantics = [#tpu.dimension_semantics<parallel>], iteration_bounds = array<i64: 1>, scalar_prefetch = 0 : i64, scratch_operands = 0 : i64, tpu.core_type = #tpu.core_type<tc>, window_params = [{transform_indices = @transform_0, window_bounds = array<i64: 2, 1024>}, {transform_indices = @transform_1, window_bounds = array<i64: 2, 1024>}]} {
    %c0 = arith.constant 0 : index
    %c0_0 = arith.constant 0 : index
    %0 = vector.load %arg1[%c0, %c0_0] : memref<2x1024xf32, #tpu.memory_space<vmem>>, vector<2x1024xf32>
    %cst = arith.constant 0.000000e+00 : f32
    %1 = vector.broadcast %cst : f32 to vector<2x1024xf32>
    %2 = arith.subf %1, %0 : vector<2x1024xf32>
    %3 = math.exp %2 : vector<2x1024xf32>
    %cst_1 = arith.constant 1.000000e+00 : f32
    %4 = vector.broadcast %cst_1 : f32 to vector<2x1024xf32>
    %5 = arith.addf %4, %3 : vector<2x1024xf32>
    %6 = tpu.reciprocal %5 : vector<2x1024xf32> -> vector<2x1024xf32>
    %cst_2 = arith.constant 1.000000e+01 : f32
    %7 = vector.broadcast %cst_2 : f32 to vector<2x1024xf32>
    %8 = arith.mulf %7, %6 : vector<2x1024xf32>
    %cst_3 = arith.constant 0.000000e+00 : f32
    %9 = vector.broadcast %cst_3 : f32 to vector<2x1024xf32>
    %10 = arith.addf %9, %8 : vector<2x1024xf32>
    %c0_4 = arith.constant 0 : index
    %c0_5 = arith.constant 0 : index
    %11 = vector.load %arg2[%c0_4, %c0_5] : memref<2x1024xf32, #tpu.memory_space<vmem>>, vector<2x1024xf32>
    tpu.vector_store %arg2[%c0_4, %c0_5], %10 {strides = array<i32>} : memref<2x1024xf32, #tpu.memory_space<vmem>>, vector<2x1024xf32>,
    return
  }
  func.func @transform_0(%arg0: i32) -> (i32, i32) {
    %c0_i32 = arith.constant 0 : i32
    %c0_i32_0 = arith.constant 0 : i32
    return %arg0, %c0_i32 : i32, i32
  }
  func.func @transform_1(%arg0: i32) -> (i32, i32) {
    %c0_i32 = arith.constant 0 : i32
    %c0_i32_0 = arith.constant 0 : i32
    return %arg0, %c0_i32 : i32, i32
  }
}

</mosaic_0001>

<bundles_post_ra>
// kernel: scaled_sigmoid.1
= control target key start
LH: loop header
LB: loop body
LE: loop exit
PB: predicated region body
PF: predicated region fallthrough
CT: control target
= control target key end

     0   :  { %s60_s0 = inlined_call_operand.vmem [shape: f32[2,1024], index: 0, kind: input, shape index: {}]   ;;  %s61_s1 = inlined_call_operand.vmem [shape: f32[2,1024], index: 1, kind: output, shape index: {}]  }
   0x1   :  { %v8_v0 = vld [vmem:[%s60_s0] sm:$0xff]  ;;  %v9_v1 = vld [vmem:[%s60_s0 + $0x8] sm:$0xff] }
   0x2   :  { %v10_v2 = vsub.f32 0.0, %v8_v0  ;;  %v11_v3 = vsub.f32 0.0, %v9_v1 }
   0x4   :  { %v12_v4 = vmul.f32 1.442695, %v10_v2  ;;  %v14_v5 = vmul.f32 1.442695, %v11_v3 }
   0x6   :  { %30 = vpow2.f32 %v12_v4 }
   0x7   :  { %32 = vpow2.f32 %v14_v5 }
  0x10   :  { %v31_v6 = vpop.eup %30 }
  0x11   :  { %v33_v7 = vpop.eup %32  ;;  %v16_v8 = vadd.f32 1.0, %v31_v6 }
  0x12   :  { %v17_v9 = vadd.f32 1.0, %v33_v7 }
  0x13   :  { %34 = vrcp.f32 %v16_v8 }
  0x14   :  { %36 = vrcp.f32 %v17_v9 }
  0x1d   :  { %v35_v10 = vpop.eup %34 }
  0x1e   :  { %v37_v11 = vpop.eup %36  ;;  %v20_v12 = vmul.f32 10.0, %v35_v10 }
  0x1f   :  { %v21_v13 = vmul.f32 10.0, %v37_v11 }
  0x20   :  { %24 = vst [vmem:[%s61_s1] sm:$0xff] %v20_v12 }
  0x21   :  { %25 = vst [vmem:[%s61_s1 + $0x8] sm:$0xff] %v21_v13 }

</bundles_post_ra>
